<compile_context>
chip_gen: v7x
topology: tpu7x:2x2x1
jax: 0.10.0
libtpu: 0.0.40
codegen_flags: <defaults>
</compile_context>

<pallas_src>
import jax
import jax.numpy as jnp
from jax.experimental import pallas as pl
from jax.experimental.pallas import tpu as pltpu

_F = 3  # Linear(3, 3)


def _dummy_scale_kernel(w_ref, b_ref, x_ref, o_ref):
    """Per-tile compute on a (3, TILE_N) lane-dense block.

    w_ref: (9,) f32 in SMEM -- PyTorch Linear weight (out, in), row-major flat.
    b_ref: (3,) f32 in SMEM -- (possibly scale/shift-folded) bias.
    out[j, :] = sum_i W[j, i] * x[i, :] + b[j]
    """
    # One full-tile load; rows sliced from the in-register value (fewer vld
    # issues than three strided ref loads).  Upcast keeps the FMA chain on the
    # f32 VPU path; no-op for f32 inputs.
    x = x_ref[...].astype(jnp.float32)  # (3, TILE_N)
    x0 = x[0:1, :]
    x1 = x[1:2, :]
    x2 = x[2:3, :]
    for j in range(_F):  # static unroll over the 3 output features
        y = (x0 * w_ref[3 * j + 0]
             + x1 * w_ref[3 * j + 1]
             + x2 * w_ref[3 * j + 2]
             + b_ref[j])
        o_ref[j:j + 1, :] = y.astype(o_ref.dtype)


def dummy_scale_forward(pos, weight, bias, scale, shift, *, key="out",
                        training=False, tile_n=65536,
                        feature_minor_in=False, feature_minor_out=False):
    """JAX/Pallas equivalent of DummyScale.forward.

    pos:    (N, 3) by default (PyTorch convention, out = pos @ W^T + b), or
            (3, N) if feature_minor_in=True (skips the wrapper transpose).
    weight: (3, 3) (out_features, in_features)
    bias:   (3,)
    scale, shift: python floats / 0-d scalars.
    Returns {key: out} with out in (N, 3) unless feature_minor_out=True.
    """
    if feature_minor_in:
        f, n = pos.shape
    else:
        n, f = pos.shape
    assert f == _F, "DummyScale uses Linear(3, 3)"

    # Fold the eval-mode affine rescale into the linear parameters:
    #   (x @ W^T + b) * s + t  ==  x @ (W*s)^T + (b*s + t)
    if training:
        w_eff = weight.astype(jnp.float32)
        b_eff = bias.astype(jnp.float32)
    else:
        s = jnp.asarray(scale, jnp.float32)
        t = jnp.asarray(shift, jnp.float32)
        w_eff = weight.astype(jnp.float32) * s
        b_eff = bias.astype(jnp.float32) * s + t

    # Tiny problems: custom-call overhead >> compute; let XLA fuse it.
    if n < 128:
        if feature_minor_in:
            out = (w_eff @ pos.astype(jnp.float32) + b_eff[:, None]).astype(pos.dtype)
            out = out if feature_minor_out else out.T
        else:
            out = (pos.astype(jnp.float32) @ w_eff.T + b_eff).astype(pos.dtype)
            out = out.T if feature_minor_out else out
        return {key: out}

    # Lane-dense layout: features on sublanes, N on lanes.  Callers that keep
    # pos feature-minor avoid this extra HBM round trip entirely.
    x_t = pos if feature_minor_in else pos.T  # (3, N)

    # Tile sizing (memory-bound op): large tiles amortize the ~0.35us/step
    # overhead.  Per pipelined buffer = 8 (sublane pad of 3) * tile_n * 4 B;
    # double-buffered in + out ~= 128 * tile_n bytes.  The 131072 cap keeps
    # the total at ~16 MiB, safe on v5e/v6e (128 MiB VMEM) and on v7x
    # (64 MiB physical / 32 MiB default scoped).
    tile_n = max(128, (min(int(tile_n), 131072) // 128) * 128)
    tile_n = min(tile_n, pl.cdiv(n, 128) * 128)  # don't over-allocate small N
    n_blocks = pl.cdiv(n, tile_n)

    vmem_need = 4 * 8 * tile_n * 4              # 2x-buffered input + output
    vmem_limit = max(16 << 20, vmem_need + (4 << 20))

    out_t = pl.pallas_call(
        _dummy_scale_kernel,
        out_shape=jax.ShapeDtypeStruct((f, n), pos.dtype),
        grid=(n_blocks,),
        in_specs=[
            # 12 scalars total: whole arrays live in SMEM, replicated per step.
            pl.BlockSpec(memory_space=pltpu.MemorySpace.SMEM),   # W flat (9,)
            pl.BlockSpec(memory_space=pltpu.MemorySpace.SMEM),   # b (3,)
            pl.BlockSpec((f, tile_n), lambda i: (0, i)),          # x tile
        ],
        # Ragged last block handled by Pallas (OOB writes discarded): no
        # materialized pad/slice copies in the wrapper.
        out_specs=pl.BlockSpec((f, tile_n), lambda i: (0, i)),
        compiler_params=pltpu.CompilerParams(
            # N is embarrassingly parallel; lets v7x's 2 TCs split the grid.
            # TODO(synk): confirm on an xprof trace that both v7x TCs are busy;
            # if not, switch this axis to pltpu.CORE_PARALLEL / pl.core_map.
            dimension_semantics=("parallel",),
            vmem_limit_bytes=vmem_limit,
        ),
    )(w_eff.reshape(-1), b_eff, x_t)

    out = out_t if feature_minor_out else out_t.T
    return {key: out}


if __name__ == "__main__":
    rng = jax.random.PRNGKey(0)
    k_pos, k_w, k_b = jax.random.split(rng, 3)

    F = 3
    bound = F ** -0.5
    # Deterministic PyTorch-style Linear(3, 3) init.
    weight = jax.random.uniform(k_w, (F, F), jnp.float32, -bound, bound)  # (out, in)
    bias = jax.random.uniform(k_b, (F,), jnp.float32, -bound, bound)
    scale_by, shift_by = 2.5, -0.75

    # --- Case 1: aligned N, eval + train modes (single big tile) ---
    N1 = 4096
    pos1 = jax.random.normal(k_pos, (N1, F), dtype=jnp.float32)
    data = {"pos": pos1}

    out_eval = dummy_scale_forward(data["pos"], weight, bias, scale_by, shift_by,
                                   key="energy", training=False)
    res_eval = jax.block_until_ready(out_eval["energy"])
    ref_eval = (pos1 @ weight.T + bias) * scale_by + shift_by
    assert res_eval.shape == (N1, F)
    assert jnp.allclose(res_eval, ref_eval, atol=1e-5, rtol=1e-5)

    out_train = dummy_scale_forward(data["pos"], weight, bias, scale_by, shift_by,
                                    key="energy", training=True)
    res_train = jax.block_until_ready(out_train["energy"])
    ref_train = pos1 @ weight.T + bias
    assert jnp.allclose(res_train, ref_train, atol=1e-5, rtol=1e-5)

    # --- Case 2: ragged last block (N not a multiple of tile_n), no pad/slice ---
    N2 = 1000
    pos2 = jax.random.normal(jax.random.PRNGKey(1), (N2, F), dtype=jnp.float32)
    out2 = dummy_scale_forward(pos2, weight, bias, scale_by, shift_by,
                               key="energy", training=False, tile_n=512)
    res2 = jax.block_until_ready(out2["energy"])
    ref2 = (pos2 @ weight.T + bias) * scale_by + shift_by
    assert res2.shape == (N2, F)
    assert jnp.allclose(res2, ref2, atol=1e-5, rtol=1e-5)

    # --- Case 3: feature-minor caller layout (no wrapper transposes) ---
    pos1_t = jnp.asarray(pos1.T)  # (3, N) kept feature-minor by the caller
    out3 = dummy_scale_forward(pos1_t, weight, bias, scale_by, shift_by,
                               key="energy", training=False,
                               feature_minor_in=True, feature_minor_out=True)
    res3 = jax.block_until_ready(out3["energy"])
    assert res3.shape == (F, N1)
    assert jnp.allclose(res3.T, ref_eval, atol=1e-5, rtol=1e-5)

    print("KERNEL_OK")
</pallas_src>

<mosaic_0001>
module attributes {stable_mosaic.version = 11 : i64} {
  func.func @_dummy_scale_kernel(%arg0: i32, %arg1: memref<9xf32, #tpu.memory_space<smem>>, %arg2: memref<3xf32, #tpu.memory_space<smem>>, %arg3: memref<3x4096xf32, #tpu.memory_space<vmem>>, %arg4: memref<3x4096xf32, #tpu.memory_space<vmem>>) attributes {dimension_semantics = [#tpu.dimension_semantics<parallel>], iteration_bounds = array<i64: 1>, scalar_prefetch = 0 : i64, scratch_operands = 0 : i64, tpu.core_type = #tpu.core_type<tc>, window_params = [{transform_indices = @transform_0, window_bounds = array<i64: 9>}, {transform_indices = @transform_1, window_bounds = array<i64: 3>}, {transform_indices = @transform_2, window_bounds = array<i64: 3, 4096>}, {transform_indices = @transform_3, window_bounds = array<i64: 3, 4096>}]} {
    %c0 = arith.constant 0 : index
    %c0_0 = arith.constant 0 : index
    %0 = vector.load %arg3[%c0, %c0_0] : memref<3x4096xf32, #tpu.memory_space<vmem>>, vector<3x4096xf32>
    %1 = vector.extract_strided_slice %0 {offsets = [0, 0], sizes = [1, 4096], strides = [1, 1]} : vector<3x4096xf32> to vector<1x4096xf32>
    %2 = vector.extract_strided_slice %0 {offsets = [1, 0], sizes = [1, 4096], strides = [1, 1]} : vector<3x4096xf32> to vector<1x4096xf32>
    %3 = vector.extract_strided_slice %0 {offsets = [2, 0], sizes = [1, 4096], strides = [1, 1]} : vector<3x4096xf32> to vector<1x4096xf32>
    %c0_1 = arith.constant 0 : index
    %4 = memref.load %arg1[%c0_1] : memref<9xf32, #tpu.memory_space<smem>>
    %5 = vector.broadcast %4 : f32 to vector<1x4096xf32>
    %6 = arith.mulf %1, %5 : vector<1x4096xf32>
    %c1 = arith.constant 1 : index
    %7 = memref.load %arg1[%c1] : memref<9xf32, #tpu.memory_space<smem>>
    %8 = vector.broadcast %7 : f32 to vector<1x4096xf32>
    %9 = arith.mulf %2, %8 : vector<1x4096xf32>
    %10 = arith.addf %6, %9 : vector<1x4096xf32>
    %c2 = arith.constant 2 : index
    %11 = memref.load %arg1[%c2] : memref<9xf32, #tpu.memory_space<smem>>
    %12 = vector.broadcast %11 : f32 to vector<1x4096xf32>
    %13 = arith.mulf %3, %12 : vector<1x4096xf32>
    %14 = arith.addf %10, %13 : vector<1x4096xf32>
    %c0_2 = arith.constant 0 : index
    %15 = memref.load %arg2[%c0_2] : memref<3xf32, #tpu.memory_space<smem>>
    %16 = vector.broadcast %15 : f32 to vector<1x4096xf32>
    %17 = arith.addf %14, %16 : vector<1x4096xf32>
    %c0_3 = arith.constant 0 : index
    %c0_4 = arith.constant 0 : index
    %18 = vector.load %arg4[%c0_3, %c0_4] : memref<3x4096xf32, #tpu.memory_space<vmem>>, vector<1x4096xf32>
    tpu.vector_store %arg4[%c0_3, %c0_4], %17 {strides = array<i32>} : memref<3x4096xf32, #tpu.memory_space<vmem>>, vector<1x4096xf32>,
    %c3 = arith.constant 3 : index
    %19 = memref.load %arg1[%c3] : memref<9xf32, #tpu.memory_space<smem>>
    %20 = vector.broadcast %19 : f32 to vector<1x4096xf32>
    %21 = arith.mulf %1, %20 : vector<1x4096xf32>
    %c4 = arith.constant 4 : index
    %22 = memref.load %arg1[%c4] : memref<9xf32, #tpu.memory_space<smem>>
    %23 = vector.broadcast %22 : f32 to vector<1x4096xf32>
    %24 = arith.mulf %2, %23 : vector<1x4096xf32>
    %25 = arith.addf %21, %24 : vector<1x4096xf32>
    %c5 = arith.constant 5 : index
    %26 = memref.load %arg1[%c5] : memref<9xf32, #tpu.memory_space<smem>>
    %27 = vector.broadcast %26 : f32 to vector<1x4096xf32>
    %28 = arith.mulf %3, %27 : vector<1x4096xf32>
    %29 = arith.addf %25, %28 : vector<1x4096xf32>
    %c1_5 = arith.constant 1 : index
    %30 = memref.load %arg2[%c1_5] : memref<3xf32, #tpu.memory_space<smem>>
    %31 = vector.broadcast %30 : f32 to vector<1x4096xf32>
    %32 = arith.addf %29, %31 : vector<1x4096xf32>
    %c1_6 = arith.constant 1 : index
    %c0_7 = arith.constant 0 : index
    %33 = vector.load %arg4[%c1_6, %c0_7] : memref<3x4096xf32, #tpu.memory_space<vmem>>, vector<1x4096xf32>
    tpu.vector_store %arg4[%c1_6, %c0_7], %32 {strides = array<i32>} : memref<3x4096xf32, #tpu.memory_space<vmem>>, vector<1x4096xf32>,
    %c6 = arith.constant 6 : index
    %34 = memref.load %arg1[%c6] : memref<9xf32, #tpu.memory_space<smem>>
    %35 = vector.broadcast %34 : f32 to vector<1x4096xf32>
    %36 = arith.mulf %1, %35 : vector<1x4096xf32>
    %c7 = arith.constant 7 : index
    %37 = memref.load %arg1[%c7] : memref<9xf32, #tpu.memory_space<smem>>
    %38 = vector.broadcast %37 : f32 to vector<1x4096xf32>
    %39 = arith.mulf %2, %38 : vector<1x4096xf32>
    %40 = arith.addf %36, %39 : vector<1x4096xf32>
    %c8 = arith.constant 8 : index
    %41 = memref.load %arg1[%c8] : memref<9xf32, #tpu.memory_space<smem>>
    %42 = vector.broadcast %41 : f32 to vector<1x4096xf32>
    %43 = arith.mulf %3, %42 : vector<1x4096xf32>
    %44 = arith.addf %40, %43 : vector<1x4096xf32>
    %c2_8 = arith.constant 2 : index
    %45 = memref.load %arg2[%c2_8] : memref<3xf32, #tpu.memory_space<smem>>
    %46 = vector.broadcast %45 : f32 to vector<1x4096xf32>
    %47 = arith.addf %44, %46 : vector<1x4096xf32>
    %c2_9 = arith.constant 2 : index
    %c0_10 = arith.constant 0 : index
    %48 = vector.load %arg4[%c2_9, %c0_10] : memref<3x4096xf32, #tpu.memory_space<vmem>>, vector<1x4096xf32>
    tpu.vector_store %arg4[%c2_9, %c0_10], %47 {strides = array<i32>} : memref<3x4096xf32, #tpu.memory_space<vmem>>, vector<1x4096xf32>,
    return
  }
  func.func @transform_0(%arg0: i32) -> i32 {
    %c0_i32 = arith.constant 0 : i32
    %c0_i32_0 = arith.constant 0 : i32
    return %c0_i32 : i32
  }
  func.func @transform_1(%arg0: i32) -> i32 {
    %c0_i32 = arith.constant 0 : i32
    %c0_i32_0 = arith.constant 0 : i32
    return %c0_i32 : i32
  }
  func.func @transform_2(%arg0: i32) -> (i32, i32) {
    %c0_i32 = arith.constant 0 : i32
    %c0_i32_0 = arith.constant 0 : i32
    return %c0_i32, %arg0 : i32, i32
  }
  func.func @transform_3(%arg0: i32) -> (i32, i32) {
    %c0_i32 = arith.constant 0 : i32
    %c0_i32_0 = arith.constant 0 : i32
    return %c0_i32, %arg0 : i32, i32
  }
}

</mosaic_0001>

<bundles_post_ra>
// kernel: tpu_custom_call.1
= control target key start
LH: loop header
LB: loop body
LE: loop exit
PB: predicated region body
PF: predicated region fallthrough
CT: control target
= control target key end

     0   :  { %8 = vsyncpa [#allocation5], 0  ;;  %s2141_s0 = inlined_call_operand.hbm [shape: f32[9], index: 0, kind: input, shape index: {}]   ;;  %s2142_s1 = inlined_call_operand.vmem [shape: f32[3], index: 1, kind: input, shape index: {}]   ;;  %s2143_s2 = inlined_call_operand.hbm [shape: f32[3,4096], index: 2, kind: input, shape index: {}]   ;;  %s2144_s3 = inlined_call_operand.hbm [shape: f32[3,4096], index: 3, kind: output, shape index: {}]  }
   0x1   :  { %9 = vsyncpa [#allocation6], 0 }
   0x2   :  { %10 = vsyncpa [#allocation3], 0 }
   0x3   :  { %11 = vsyncpa [#allocation4], 0  ;;  %s26_s14 = sshll.u32 %s2142_s1, 4  ;;  %s1513_s17 = scalar_lea.hbm %s2141_s0, 16  ;;  %s27_s14 = int_to_ptr.vmem [resolvable:$true] %s26_s14 }
   0x4   :  { %p1514_p0 = scmp.ne.s32.totalorder %s2141_s0, %s1513_s17  ;;  %p1517_p1 = scmp.lt.u32.totalorder %s1513_s17, %s2141_s0 }
   0x6   :  { %p1519_p2 = pnand %p1517_p1, %p1514_p0 }
   0x8   :  { %1522 = shalt.err (!%p1519_p2)
}
   0x9   :  { %s1587_s22 = smov [#allocation2]   ;;  %s1523_s1 = scalar_lea.vmem %s27_s14, 16 }
   0xa   :  { %19 = dma.hbm_to_smem %s2141_s0, 16, %s1587_s22, [#allocation5]  }
   0xb   :  { %p1524_p3 = scmp.ne.s32.totalorder %s27_s14, %s1523_s1  ;;  %p1528_p4 = scmp.lt.s32.totalorder %s27_s14, %s27_s14 }
   0xc   :  { %p1529_p5 = scmp.lt.s32.totalorder %s1523_s1, %s1523_s1 }
   0xe   :  { %p1530_p6 = por %p1529_p5, %p1528_p4 }
  0x10   :  { %p1531_p7 = pnand %p1530_p6, %p1524_p3 }
  0x12   :  { %1534 = shalt.err (!%p1531_p7)
}
  0x13   :  { %s1588_s25 = smov [#allocation7]   ;;  %s1589_s26 = smov [#allocation8]  }
  0x14   :  { %29 = dma.vmem_to_smem %s27_s14, 16, %s1588_s25, [#allocation6]  }
  0x15   :  { %s36_s27 = sshll.u32 %s1589_s26, 4  ;;  %s1535_s30 = scalar_lea.hbm %s2143_s2, 2048  ;;  %s37_s27 = int_to_ptr.vmem [resolvable:$true] %s36_s27 }
  0x16   :  { %p1536_p8 = scmp.ne.s32.totalorder %s2143_s2, %s1535_s30  ;;  %p1539_p9 = scmp.lt.u32.totalorder %s1535_s30, %s2143_s2 }
  0x18   :  { %p1541_p10 = pnand %p1539_p9, %p1536_p8 }
  0x1a   :  { %1544 = shalt.err (!%p1541_p10)
}
  0x1b   :  { %s1545_s7 = scalar_lea.vmem %s37_s27, 2048  ;;  %p1550_p12 = scmp.lt.s32.totalorder %s37_s27, %s37_s27 }
  0x1c   :  { %p1546_p11 = scmp.ne.s32.totalorder %s37_s27, %s1545_s7  ;;  %p1551_p13 = scmp.lt.s32.totalorder %s1545_s7, %s1545_s7 }
  0x1e   :  { %p1552_p0 = por %p1551_p13, %p1550_p12 }
  0x20   :  { %p1553_p1 = pnand %p1552_p0, %p1546_p11 }
  0x22   :  { %1556 = shalt.err (!%p1553_p1)
}
  0x23   :  { %39 = dma.hbm_to_vmem [thread:$0]  %s2143_s2, 2048, %s37_s27, [#allocation3]  }
  0x24   :  { %1579 = dma.done.wait [#allocation5], 16  }
  0x25   :  { %1580 = vsyncadd [#allocation5], 4294967280 }
  0x26   :  { %1581 = dma.done.wait [#allocation6], 16  }
  0x27   :  { %1582 = vsyncadd [#allocation6], 4294967280 }
  0x28   :  { %1583 = dma.done.wait [#allocation3], 2048  }
  0x29   :  { %1584 = vsyncadd [#allocation3], 4294965248 }
  0x2a   :  { %49 = sfence }
  0x2b   :  { %v317_v0 = vlaneseq  ;;  %s66_s10 = sld [smem:[#allocation2]]  ;;  %s1402_s11 = sld [smem:[#allocation2 + $0x1]]  ;;  %v1590_v1 = vmov 1966171168   ;;  %v1639_v4 = vld [vmem:[#allocation8] sm:$0x77] }
  0x2c   :  { %s1419_s12 = sld [smem:[#allocation2 + $0x2]]  ;;  %s280_s13 = sld [smem:[#allocation7]]  ;;  %v315_v2 = vunpack.c.l.s4 %v1590_v1  ;;  %v1641_v6 = vld [vmem:[#allocation8 + $0x8] sm:$0x77]  ;;  %v1643_v7 = vld [vmem:[#allocation8 + $0x10] sm:$0x77] }
  0x2d   :  { %v318_v3 = vshrl.u32 %v317_v0, 7  ;;  %v1645_v8 = vld [vmem:[#allocation8 + $0x18] sm:$0x77]  ;;  %v1669_v20 = vld [vmem:[#allocation8 + $0x20] sm:$0x77]  ;;  %s1781_s2 = sld [smem:[#allocation2 + $0x3]] }
  0x2e   :  { %v316_v5 = vunpack.c.0.s8 %v315_v2  ;;  %v1671_v21 = vld [vmem:[#allocation8 + $0x28] sm:$0x77]  ;;  %v1689_v38 = vld [vmem:[#allocation8 + $0x30] sm:$0x77]  ;;  %v1691_v43 = vld [vmem:[#allocation8 + $0x38] sm:$0x77] }
  0x2f   :  { %s1796_s14 = sld [smem:[#allocation2 + $0x4]]  ;;  %s1812_s15 = sld [smem:[#allocation2 + $0x5]] }
  0x30   :  { %v1651_v11 = vsub.s32 %v316_v5, %v318_v3  ;;  %s1828_s16 = sld [smem:[#allocation7 + $0x1]]  ;;  %s1937_s17 = sld [smem:[#allocation2 + $0x6]] }
  0x31   :  { %v1647_v9 = vstv %s66_s10  ;;  %v1649_v10 = vstv %s1402_s11  ;;  %s1952_s18 = sld [smem:[#allocation2 + $0x7]]  ;;  %s1968_s19 = sld [smem:[#allocation2 + $0x8]] }
  0x32   :  { %v68_v12 = vmul.f32 %v1647_v9, %v1639_v4  ;;  %v69_v13 = vmul.f32 %v1647_v9, %v1641_v6  ;;  %v70_v14 = vmul.f32 %v1647_v9, %v1643_v7  ;;  %v71_v15 = vmul.f32 %v1647_v9, %v1645_v8  ;;  %s1984_s20 = sld [smem:[#allocation7 + $0x2]]  ;;  %s1591_s21 = smov [#allocation9]  }
  0x33   :  { %v86_v16 = vmul.f32 %v1649_v10, %v1639_v4  ;;  %v87_v17 = vmul.f32 %v1649_v10, %v1641_v6  ;;  %v88_v18 = vmul.f32 %v1649_v10, %v1643_v7  ;;  %v89_v19 = vmul.f32 %v1649_v10, %v1645_v8  ;;  %s1391_s22 = sshll.u32 %s1591_s21, 4  ;;  %s1392_s22 = int_to_ptr.vmem [resolvable:$true] %s1391_s22 }
  0x34   :  { %v1673_v22 = vstv %s1419_s12  ;;  %v1675_v23 = vstv %s280_s13  ;;  %v72_v24 = vmul.f32 %v1647_v9, %v1669_v20  ;;  %v73_v25 = vmul.f32 %v1647_v9, %v1671_v21  ;;  %s1557_s23 = scalar_lea.vmem %s1392_s22, 2048  ;;  %p1562_p3 = scmp.lt.s32.totalorder %s1392_s22, %s1392_s22 }
  0x35   :  { %v1403_v26 = vrot.slane %v86_v16, 9  ;;  %v1404_v27 = vrot.slane %v87_v17, 9  ;;  %v1405_v28 = vrot.slane %v88_v18, 9  ;;  %v1406_v29 = vrot.slane %v89_v19, 9  ;;  %v1721_v19 = vld [vmem:[#allocation8 + $0x40] sm:$0x77]  ;;  %p1558_p2 = scmp.ne.s32.totalorder %s1392_s22, %s1557_s23  ;;  %p1563_p4 = scmp.lt.s32.totalorder %s1557_s23, %s1557_s23 }
  0x36   :  { %v184_v30 = vmul.f32 %v1673_v22, %v1639_v4  ;;  %v185_v31 = vmul.f32 %v1673_v22, %v1641_v6  ;;  %v186_v32 = vmul.f32 %v1673_v22, %v1643_v7  ;;  %v187_v33 = vmul.f32 %v1673_v22, %v1645_v8 }
  0x37   :  { %v166_v34 = vadd.f32 %v1403_v26, %v68_v12  ;;  %v167_v35 = vadd.f32 %v1404_v27, %v69_v13  ;;  %v168_v36 = vadd.f32 %v1405_v28, %v70_v14  ;;  %v169_v37 = vadd.f32 %v1406_v29, %v71_v15  ;;  %p1564_p5 = por %p1563_p4, %p1562_p3 }
  0x38   :  { %v1420_v39 = vrot.slane %v184_v30, 10  ;;  %v1421_v40 = vrot.slane %v185_v31, 10  ;;  %v1422_v41 = vrot.slane %v186_v32, 10  ;;  %v1423_v42 = vrot.slane %v187_v33, 10  ;;  %v1731_v33 = vld [vmem:[#allocation8 + $0x50] sm:$0x77] }
  0x39   :  { %v74_v44 = vmul.f32 %v1647_v9, %v1689_v38  ;;  %v75_v45 = vmul.f32 %v1647_v9, %v1691_v43  ;;  %v90_v46 = vmul.f32 %v1649_v10, %v1669_v20  ;;  %v91_v47 = vmul.f32 %v1649_v10, %v1671_v21  ;;  %p1565_p6 = pnand %p1564_p5, %p1558_p2 }
  0x3a   :  { %v264_v48 = vadd.f32 %v1420_v39, %v166_v34  ;;  %v265_v49 = vadd.f32 %v1421_v40, %v167_v35  ;;  %v266_v50 = vadd.f32 %v1422_v41, %v168_v36  ;;  %v267_v51 = vadd.f32 %v1423_v42, %v169_v37  ;;  %v1733_v34 = vld [vmem:[#allocation8 + $0x58] sm:$0x77] }
  0x3b   :  { %v92_v52 = vmul.f32 %v1649_v10, %v1689_v38  ;;  %v93_v53 = vmul.f32 %v1649_v10, %v1691_v43  ;;  %v1407_v54 = vrot.slane %v90_v46, 9  ;;  %v1408_v55 = vrot.slane %v91_v47, 9 }
  0x3c   :  { %v282_v56 = vadd.f32 %v1675_v23, %v264_v48  ;;  %v283_v57 = vadd.f32 %v1675_v23, %v265_v49  ;;  %v284_v58 = vadd.f32 %v1675_v23, %v266_v50  ;;  %v285_v59 = vadd.f32 %v1675_v23, %v267_v51 }
  0x3d   :  { %v1409_v60 = vrot.slane %v92_v52, 9  ;;  %v1410_v61 = vrot.slane %v93_v53, 9  ;;  %v170_v62 = vadd.f32 %v1407_v54, %v72_v24  ;;  %v171_v63 = vadd.f32 %v1408_v55, %v73_v25  ;;  %v1723_v24 = vld [vmem:[#allocation8 + $0x48] sm:$0x77] }
  0x3e   :  { %v320_v0 = vrot.slane %v282_v56, %v1651_v11  ;;  %v327_v1 = vrot.slane %v283_v57, %v1651_v11  ;;  %v334_v2 = vrot.slane %v284_v58, %v1651_v11  ;;  %v341_v3 = vrot.slane %v285_v59, %v1651_v11 }
  0x3f   :  { %v172_v5 = vadd.f32 %v1409_v60, %v74_v44  ;;  %v173_v12 = vadd.f32 %v1410_v61, %v75_v45  ;;  %v188_v13 = vmul.f32 %v1673_v22, %v1669_v20  ;;  %v189_v14 = vmul.f32 %v1673_v22, %v1671_v21 }
  0x40   :  { %v342_v15 = vcombine.low %v320_v0, %v327_v1  ;;  %v343_v16 = vcombine.low %v334_v2, %v341_v3  ;;  %v190_v17 = vmul.f32 %v1673_v22, %v1689_v38  ;;  %v191_v18 = vmul.f32 %v1673_v22, %v1691_v43 }
  0x41   :  { %v1424_v25 = vrot.slane %v188_v13, 10  ;;  %v1425_v26 = vrot.slane %v189_v14, 10  ;;  %v76_v27 = vmul.f32 %v1647_v9, %v1721_v19  ;;  %v77_v28 = vmul.f32 %v1647_v9, %v1723_v24 }
  0x42   :  { %v350_v29 = vrot.slane %v342_v15, %v1651_v11  ;;  %v357_v30 = vrot.slane %v343_v16, %v1651_v11  ;;  %v1426_v31 = vrot.slane %v190_v17, 10  ;;  %v1427_v32 = vrot.slane %v191_v18, 10  ;;  %v1766_v16 = vld [vmem:[#allocation8 + $0x68] sm:$0x77] }
  0x43   :  { %v268_v35 = vadd.f32 %v1424_v25, %v170_v62  ;;  %v269_v36 = vadd.f32 %v1425_v26, %v171_v63  ;;  %v78_v37 = vmul.f32 %v1647_v9, %v1731_v33  ;;  %v79_v39 = vmul.f32 %v1647_v9, %v1733_v34 }
  0x44   :  { %v358_v40 = vcombine.low %v350_v29, %v357_v30  ;;  %v270_v41 = vadd.f32 %v1426_v31, %v172_v5  ;;  %v271_v42 = vadd.f32 %v1427_v32, %v173_v12  ;;  %v94_v44 = vmul.f32 %v1649_v10, %v1721_v19  ;;  %v1761_v12 = vld [vmem:[#allocation8 + $0x60] sm:$0x77] }
  0x45   :  { %v286_v45 = vadd.f32 %v1675_v23, %v268_v35  ;;  %v287_v46 = vadd.f32 %v1675_v23, %v269_v36  ;;  %v95_v47 = vmul.f32 %v1649_v10, %v1723_v24  ;;  %v96_v48 = vmul.f32 %v1649_v10, %v1731_v33 }
  0x46   :  { %498 = vst [vmem:[#allocation9] ss:$4 sm:$0xff] %v358_v40  ;;  %v288_v49 = vadd.f32 %v1675_v23, %v270_v41  ;;  %v289_v50 = vadd.f32 %v1675_v23, %v271_v42  ;;  %v97_v51 = vmul.f32 %v1649_v10, %v1733_v34  ;;  %v1411_v52 = vrot.slane %v94_v44, 9 }
  0x47   :  { %v365_v53 = vrot.slane %v286_v45, %v1651_v11  ;;  %v372_v54 = vrot.slane %v287_v46, %v1651_v11  ;;  %v1412_v55 = vrot.slane %v95_v47, 9  ;;  %v1413_v56 = vrot.slane %v96_v48, 9 }
  0x48   :  { %v379_v57 = vrot.slane %v288_v49, %v1651_v11  ;;  %v386_v58 = vrot.slane %v289_v50, %v1651_v11  ;;  %v1414_v59 = vrot.slane %v97_v51, 9  ;;  %v174_v60 = vadd.f32 %v1411_v52, %v76_v27  ;;  %v1771_v27 = vld [vmem:[#allocation8 + $0x70] sm:$0x77] }
  0x49   :  { %v387_v61 = vcombine.low %v365_v53, %v372_v54  ;;  %v175_v62 = vadd.f32 %v1412_v55, %v77_v28  ;;  %v176_v63 = vadd.f32 %v1413_v56, %v78_v37  ;;  %v192_v0 = vmul.f32 %v1673_v22, %v1721_v19  ;;  %v1773_v28 = vld [vmem:[#allocation8 + $0x78] sm:$0x77] }
  0x4a   :  { %v388_v1 = vcombine.low %v379_v57, %v386_v58  ;;  %v177_v2 = vadd.f32 %v1414_v59, %v79_v39  ;;  %v193_v3 = vmul.f32 %v1673_v22, %v1723_v24  ;;  %v194_v5 = vmul.f32 %v1673_v22, %v1731_v33 }
  0x4b   :  { %v395_v13 = vrot.slane %v387_v61, %v1651_v11  ;;  %v195_v14 = vmul.f32 %v1673_v22, %v1733_v34  ;;  %v1428_v15 = vrot.slane %v192_v0, 10  ;;  %v80_v17 = vmul.f32 %v1647_v9, %v1761_v12 }
  0x4c   :  { %v402_v18 = vrot.slane %v388_v1, %v1651_v11  ;;  %v1429_v25 = vrot.slane %v193_v3, 10  ;;  %v1430_v26 = vrot.slane %v194_v5, 10  ;;  %v81_v29 = vmul.f32 %v1647_v9, %v1766_v16 }
  0x4d   :  { %v1431_v30 = vrot.slane %v195_v14, 10  ;;  %v272_v31 = vadd.f32 %v1428_v15, %v174_v60  ;;  %v82_v32 = vmul.f32 %v1647_v9, %v1771_v27  ;;  %v83_v35 = vmul.f32 %v1647_v9, %v1773_v28 }
  0x4e   :  { %v403_v36 = vcombine.low %v395_v13, %v402_v18  ;;  %v273_v37 = vadd.f32 %v1429_v25, %v175_v62  ;;  %v274_v39 = vadd.f32 %v1430_v26, %v176_v63  ;;  %v98_v40 = vmul.f32 %v1649_v10, %v1761_v12 }
  0x4f   :  { %v275_v41 = vadd.f32 %v1431_v30, %v177_v2  ;;  %v290_v42 = vadd.f32 %v1675_v23, %v272_v31  ;;  %v99_v44 = vmul.f32 %v1649_v10, %v1766_v16  ;;  %v100_v45 = vmul.f32 %v1649_v10, %v1771_v27 }
  0x50   :  { %500 = vst [vmem:[#allocation9 + $0x20] ss:$4 sm:$0xff] %v403_v36  ;;  %v291_v9 = vadd.f32 %v1675_v23, %v273_v37  ;;  %v292_v46 = vadd.f32 %v1675_v23, %v274_v39  ;;  %v101_v47 = vmul.f32 %v1649_v10, %v1773_v28  ;;  %v1415_v48 = vrot.slane %v98_v40, 9 }
  0x51   :  { %v293_v49 = vadd.f32 %v1675_v23, %v275_v41  ;;  %v410_v50 = vrot.slane %v290_v42, %v1651_v11  ;;  %v1416_v51 = vrot.slane %v99_v44, 9  ;;  %v1417_v52 = vrot.slane %v100_v45, 9 }
  0x52   :  { %v417_v53 = vrot.slane %v291_v9, %v1651_v11  ;;  %v424_v54 = vrot.slane %v292_v46, %v1651_v11  ;;  %v1418_v55 = vrot.slane %v101_v47, 9  ;;  %v178_v56 = vadd.f32 %v1415_v48, %v80_v17 }
  0x53   :  { %v431_v57 = vrot.slane %v293_v49, %v1651_v11  ;;  %v179_v58 = vadd.f32 %v1416_v51, %v81_v29  ;;  %v180_v10 = vadd.f32 %v1417_v52, %v82_v32  ;;  %v196_v59 = vmul.f32 %v1673_v22, %v1761_v12 }
  0x54   :  { %v432_v60 = vcombine.low %v410_v50, %v417_v53  ;;  %v181_v61 = vadd.f32 %v1418_v55, %v83_v35  ;;  %v197_v62 = vmul.f32 %v1673_v22, %v1766_v16  ;;  %v198_v63 = vmul.f32 %v1673_v22, %v1771_v27 }
  0x55   :  { %v433_v0 = vcombine.low %v424_v54, %v431_v57  ;;  %v199_v1 = vmul.f32 %v1673_v22, %v1773_v28  ;;  %v1432_v2 = vrot.slane %v196_v59, 10  ;;  %v1810_v3 = vstv %s1781_s2 }
  0x56   :  { %v440_v5 = vrot.slane %v432_v60, %v1651_v11  ;;  %v1433_v13 = vrot.slane %v197_v62, 10  ;;  %v1434_v14 = vrot.slane %v198_v63, 10  ;;  %v507_v15 = vmul.f32 %v1810_v3, %v1639_v4 }
  0x57   :  { %v447_v17 = vrot.slane %v433_v0, %v1651_v11  ;;  %v1435_v18 = vrot.slane %v199_v1, 10  ;;  %v276_v25 = vadd.f32 %v1432_v2, %v178_v56  ;;  %v508_v22 = vmul.f32 %v1810_v3, %v1641_v6 }
  0x58   :  { %v277_v26 = vadd.f32 %v1433_v13, %v179_v58  ;;  %v278_v29 = vadd.f32 %v1434_v14, %v180_v10  ;;  %v509_v30 = vmul.f32 %v1810_v3, %v1643_v7  ;;  %v510_v31 = vmul.f32 %v1810_v3, %v1645_v8 }
  0x59   :  { %v448_v32 = vcombine.low %v440_v5, %v447_v17  ;;  %v279_v35 = vadd.f32 %v1435_v18, %v181_v61  ;;  %v294_v36 = vadd.f32 %v1675_v23, %v276_v25  ;;  %v1826_v37 = vstv %s1796_s14 }
  0x5a   :  { %v295_v39 = vadd.f32 %v1675_v23, %v277_v26  ;;  %v296_v40 = vadd.f32 %v1675_v23, %v278_v29  ;;  %v525_v41 = vmul.f32 %v1826_v37, %v1639_v4  ;;  %v526_v42 = vmul.f32 %v1826_v37, %v1641_v6 }
  0x5b   :  { %502 = vst [vmem:[#allocation9 + $0x40] ss:$4 sm:$0xff] %v448_v32  ;;  %v297_v44 = vadd.f32 %v1675_v23, %v279_v35  ;;  %v455_v45 = vrot.slane %v294_v36, %v1651_v11  ;;  %v527_v9 = vmul.f32 %v1826_v37, %v1643_v7  ;;  %v528_v46 = vmul.f32 %v1826_v37, %v1645_v8 }
  0x5c   :  { %v462_v47 = vrot.slane %v295_v39, %v1651_v11  ;;  %v469_v48 = vrot.slane %v296_v40, %v1651_v11  ;;  %v1438_v49 = vrot.slane %v525_v41, 9  ;;  %v1439_v50 = vrot.slane %v526_v42, 9 }
  0x5d   :  { %v476_v51 = vrot.slane %v297_v44, %v1651_v11  ;;  %v1440_v52 = vrot.slane %v527_v9, 9  ;;  %v1441_v53 = vrot.slane %v528_v46, 9  ;;  %v1846_v23 = vstv %s1812_s15 }
  0x5e   :  { %v477_v54 = vcombine.low %v455_v45, %v462_v47  ;;  %v605_v55 = vadd.f32 %v1438_v49, %v507_v15  ;;  %v606_v56 = vadd.f32 %v1439_v50, %v508_v22  ;;  %v623_v57 = vmul.f32 %v1846_v23, %v1639_v4 }
  0x5f   :  { %v478_v58 = vcombine.low %v469_v48, %v476_v51  ;;  %v607_v10 = vadd.f32 %v1440_v52, %v509_v30  ;;  %v608_v59 = vadd.f32 %v1441_v53, %v510_v31  ;;  %v624_v60 = vmul.f32 %v1846_v23, %v1641_v6 }
  0x60   :  { %v485_v61 = vrot.slane %v477_v54, %v1651_v11  ;;  %v625_v62 = vmul.f32 %v1846_v23, %v1643_v7  ;;  %v626_v63 = vmul.f32 %v1846_v23, %v1645_v8  ;;  %v1455_v0 = vrot.slane %v623_v57, 10 }
  0x61   :  { %v492_v1 = vrot.slane %v478_v58, %v1651_v11  ;;  %v1456_v2 = vrot.slane %v624_v60, 10  ;;  %v1859_v5 = vstv %s1828_s16  ;;  %v511_v13 = vmul.f32 %v1810_v3, %v1669_v20 }
  0x62   :  { %v1457_v14 = vrot.slane %v625_v62, 10  ;;  %v1458_v15 = vrot.slane %v626_v63, 10  ;;  %v703_v17 = vadd.f32 %v1455_v0, %v605_v55  ;;  %v512_v18 = vmul.f32 %v1810_v3, %v1671_v21 }
  0x63   :  { %v493_v25 = vcombine.low %v485_v61, %v492_v1  ;;  %v704_v22 = vadd.f32 %v1456_v2, %v606_v56  ;;  %v513_v26 = vmul.f32 %v1810_v3, %v1689_v38  ;;  %v514_v29 = vmul.f32 %v1810_v3, %v1691_v43 }
  0x64   :  { %v705_v30 = vadd.f32 %v1457_v14, %v607_v10  ;;  %v706_v31 = vadd.f32 %v1458_v15, %v608_v59  ;;  %v721_v32 = vadd.f32 %v1859_v5, %v703_v17  ;;  %v529_v35 = vmul.f32 %v1826_v37, %v1669_v20 }
  0x65   :  { %504 = vst [vmem:[#allocation9 + $0x60] ss:$4 sm:$0xff] %v493_v25  ;;  %v722_v36 = vadd.f32 %v1859_v5, %v704_v22  ;;  %v530_v39 = vmul.f32 %v1826_v37, %v1671_v21  ;;  %v531_v40 = vmul.f32 %v1826_v37, %v1689_v38  ;;  %v532_v41 = vmul.f32 %v1826_v37, %v1691_v43 }
  0x66   :  { %v723_v42 = vadd.f32 %v1859_v5, %v705_v30  ;;  %v724_v44 = vadd.f32 %v1859_v5, %v706_v31  ;;  %v759_v45 = vrot.slane %v721_v32, %v1651_v11  ;;  %v1442_v9 = vrot.slane %v529_v35, 9 }
  0x67   :  { %v766_v46 = vrot.slane %v722_v36, %v1651_v11  ;;  %v1443_v47 = vrot.slane %v530_v39, 9  ;;  %v1444_v48 = vrot.slane %v531_v40, 9  ;;  %v1445_v49 = vrot.slane %v532_v41, 9 }
  0x68   :  { %v773_v50 = vrot.slane %v723_v42, %v1651_v11  ;;  %v780_v51 = vrot.slane %v724_v44, %v1651_v11  ;;  %v609_v52 = vadd.f32 %v1442_v9, %v511_v13  ;;  %v627_v53 = vmul.f32 %v1846_v23, %v1669_v20 }
  0x69   :  { %v781_v54 = vcombine.low %v759_v45, %v766_v46  ;;  %v610_v55 = vadd.f32 %v1443_v47, %v512_v18  ;;  %v611_v56 = vadd.f32 %v1444_v48, %v513_v26  ;;  %v612_v57 = vadd.f32 %v1445_v49, %v514_v29 }
  0x6a   :  { %v782_v58 = vcombine.low %v773_v50, %v780_v51  ;;  %v628_v10 = vmul.f32 %v1846_v23, %v1671_v21  ;;  %v629_v59 = vmul.f32 %v1846_v23, %v1689_v38  ;;  %v630_v60 = vmul.f32 %v1846_v23, %v1691_v43 }
  0x6b   :  { %v789_v61 = vrot.slane %v781_v54, %v1651_v11  ;;  %v1459_v62 = vrot.slane %v627_v53, 10  ;;  %v515_v63 = vmul.f32 %v1810_v3, %v1721_v19  ;;  %v516_v0 = vmul.f32 %v1810_v3, %v1723_v24 }
  0x6c   :  { %v796_v1 = vrot.slane %v782_v58, %v1651_v11  ;;  %v1460_v2 = vrot.slane %v628_v10, 10  ;;  %v1461_v13 = vrot.slane %v629_v59, 10  ;;  %v1462_v14 = vrot.slane %v630_v60, 10 }
  0x6d   :  { %v707_v15 = vadd.f32 %v1459_v62, %v609_v52  ;;  %v517_v17 = vmul.f32 %v1810_v3, %v1731_v33  ;;  %v518_v18 = vmul.f32 %v1810_v3, %v1733_v34  ;;  %v533_v25 = vmul.f32 %v1826_v37, %v1721_v19 }
  0x6e   :  { %v797_v22 = vcombine.low %v789_v61, %v796_v1  ;;  %v708_v26 = vadd.f32 %v1460_v2, %v610_v55  ;;  %v709_v29 = vadd.f32 %v1461_v13, %v611_v56  ;;  %v710_v30 = vadd.f32 %v1462_v14, %v612_v57 }
  0x6f   :  { %v725_v31 = vadd.f32 %v1859_v5, %v707_v15  ;;  %v534_v32 = vmul.f32 %v1826_v37, %v1723_v24  ;;  %v535_v35 = vmul.f32 %v1826_v37, %v1731_v33  ;;  %v536_v36 = vmul.f32 %v1826_v37, %v1733_v34 }
  0x70   :  { %938 = vst [vmem:[#allocation9 + $0x1] ss:$4 sm:$0xff] %v797_v22  ;;  %v726_v39 = vadd.f32 %v1859_v5, %v708_v26  ;;  %v727_v40 = vadd.f32 %v1859_v5, %v709_v29  ;;  %v728_v41 = vadd.f32 %v1859_v5, %v710_v30  ;;  %v1446_v42 = vrot.slane %v533_v25, 9 }
  0x71   :  { %v804_v44 = vrot.slane %v725_v31, %v1651_v11  ;;  %v1447_v45 = vrot.slane %v534_v32, 9  ;;  %v1448_v9 = vrot.slane %v535_v35, 9  ;;  %v1449_v46 = vrot.slane %v536_v36, 9 }
  0x72   :  { %v811_v47 = vrot.slane %v726_v39, %v1651_v11  ;;  %v818_v48 = vrot.slane %v727_v40, %v1651_v11  ;;  %v825_v49 = vrot.slane %v728_v41, %v1651_v11  ;;  %v613_v50 = vadd.f32 %v1446_v42, %v515_v63 }
  0x73   :  { %v614_v51 = vadd.f32 %v1447_v45, %v516_v0  ;;  %v615_v52 = vadd.f32 %v1448_v9, %v517_v17  ;;  %v616_v53 = vadd.f32 %v1449_v46, %v518_v18  ;;  %v631_v54 = vmul.f32 %v1846_v23, %v1721_v19 }
  0x74   :  { %v826_v55 = vcombine.low %v804_v44, %v811_v47  ;;  %v827_v56 = vcombine.low %v818_v48, %v825_v49  ;;  %v632_v57 = vmul.f32 %v1846_v23, %v1723_v24  ;;  %v633_v58 = vmul.f32 %v1846_v23, %v1731_v33 }
  0x75   :  { %v634_v10 = vmul.f32 %v1846_v23, %v1733_v34  ;;  %v1463_v59 = vrot.slane %v631_v54, 10  ;;  %v519_v60 = vmul.f32 %v1810_v3, %v1761_v12  ;;  %v520_v61 = vmul.f32 %v1810_v3, %v1766_v16 }
  0x76   :  { %v834_v62 = vrot.slane %v826_v55, %v1651_v11  ;;  %v841_v63 = vrot.slane %v827_v56, %v1651_v11  ;;  %v1464_v0 = vrot.slane %v632_v57, 10  ;;  %v1465_v1 = vrot.slane %v633_v58, 10 }
  0x77   :  { %v1466_v2 = vrot.slane %v634_v10, 10  ;;  %v711_v13 = vadd.f32 %v1463_v59, %v613_v50  ;;  %v521_v14 = vmul.f32 %v1810_v3, %v1771_v27  ;;  %v522_v15 = vmul.f32 %v1810_v3, %v1773_v28 }
  0x78   :  { %v842_v17 = vcombine.low %v834_v62, %v841_v63  ;;  %v712_v18 = vadd.f32 %v1464_v0, %v614_v51  ;;  %v713_v25 = vadd.f32 %v1465_v1, %v615_v52  ;;  %v537_v22 = vmul.f32 %v1826_v37, %v1761_v12 }
  0x79   :  { %v714_v26 = vadd.f32 %v1466_v2, %v616_v53  ;;  %v729_v29 = vadd.f32 %v1859_v5, %v711_v13  ;;  %v538_v30 = vmul.f32 %v1826_v37, %v1766_v16  ;;  %v539_v31 = vmul.f32 %v1826_v37, %v1771_v27 }
  0x7a   :  { %940 = vst [vmem:[#allocation9 + $0x21] ss:$4 sm:$0xff] %v842_v17  ;;  %v730_v3 = vadd.f32 %v1859_v5, %v712_v18  ;;  %v731_v32 = vadd.f32 %v1859_v5, %v713_v25  ;;  %v540_v35 = vmul.f32 %v1826_v37, %v1773_v28  ;;  %v1450_v36 = vrot.slane %v537_v22, 9 }
  0x7b   :  { %v732_v39 = vadd.f32 %v1859_v5, %v714_v26  ;;  %v849_v40 = vrot.slane %v729_v29, %v1651_v11  ;;  %v1451_v41 = vrot.slane %v538_v30, 9  ;;  %v1452_v42 = vrot.slane %v539_v31, 9 }
  0x7c   :  { %v856_v44 = vrot.slane %v730_v3, %v1651_v11  ;;  %v863_v45 = vrot.slane %v731_v32, %v1651_v11  ;;  %v1453_v9 = vrot.slane %v540_v35, 9  ;;  %v617_v46 = vadd.f32 %v1450_v36, %v519_v60 }
  0x7d   :  { %v870_v47 = vrot.slane %v732_v39, %v1651_v11  ;;  %v618_v48 = vadd.f32 %v1451_v41, %v520_v61  ;;  %v619_v37 = vadd.f32 %v1452_v42, %v521_v14  ;;  %v635_v49 = vmul.f32 %v1846_v23, %v1761_v12 }
  0x7e   :  { %v871_v50 = vcombine.low %v849_v40, %v856_v44  ;;  %v620_v51 = vadd.f32 %v1453_v9, %v522_v15  ;;  %v636_v52 = vmul.f32 %v1846_v23, %v1766_v16  ;;  %v637_v53 = vmul.f32 %v1846_v23, %v1771_v27 }
  0x7f   :  { %v872_v54 = vcombine.low %v863_v45, %v870_v47  ;;  %v638_v55 = vmul.f32 %v1846_v23, %v1773_v28  ;;  %v1467_v56 = vrot.slane %v635_v49, 10  ;;  %v1966_v57 = vstv %s1937_s17 }
  0x80   :  { %v879_v58 = vrot.slane %v871_v50, %v1651_v11  ;;  %v1468_v10 = vrot.slane %v636_v52, 10  ;;  %v1469_v59 = vrot.slane %v637_v53, 10  ;;  %v947_v60 = vmul.f32 %v1966_v57, %v1639_v4 }
  0x81   :  { %v886_v61 = vrot.slane %v872_v54, %v1651_v11  ;;  %v1470_v62 = vrot.slane %v638_v55, 10  ;;  %v715_v63 = vadd.f32 %v1467_v56, %v617_v46  ;;  %v948_v23 = vmul.f32 %v1966_v57, %v1641_v6 }
  0x82   :  { %v716_v0 = vadd.f32 %v1468_v10, %v618_v48  ;;  %v717_v1 = vadd.f32 %v1469_v59, %v619_v37  ;;  %v949_v2 = vmul.f32 %v1966_v57, %v1643_v7  ;;  %v950_v13 = vmul.f32 %v1966_v57, %v1645_v8 }
  0x83   :  { %v887_v14 = vcombine.low %v879_v58, %v886_v61  ;;  %v718_v15 = vadd.f32 %v1470_v62, %v620_v51  ;;  %v733_v17 = vadd.f32 %v1859_v5, %v715_v63  ;;  %v1982_v18 = vstv %s1952_s18 }
  0x84   :  { %v734_v25 = vadd.f32 %v1859_v5, %v716_v0  ;;  %v735_v22 = vadd.f32 %v1859_v5, %v717_v1  ;;  %v965_v26 = vmul.f32 %v1982_v18, %v1639_v4  ;;  %v966_v29 = vmul.f32 %v1982_v18, %v1641_v6 }
  0x85   :  { %942 = vst [vmem:[#allocation9 + $0x41] ss:$4 sm:$0xff] %v887_v14  ;;  %v736_v30 = vadd.f32 %v1859_v5, %v718_v15  ;;  %v894_v31 = vrot.slane %v733_v17, %v1651_v11  ;;  %v967_v3 = vmul.f32 %v1982_v18, %v1643_v7  ;;  %v968_v32 = vmul.f32 %v1982_v18, %v1645_v8 }
  0x86   :  { %v901_v35 = vrot.slane %v734_v25, %v1651_v11  ;;  %v908_v36 = vrot.slane %v735_v22, %v1651_v11  ;;  %v1474_v39 = vrot.slane %v965_v26, 9  ;;  %v1475_v40 = vrot.slane %v966_v29, 9 }
  0x87   :  { %v915_v41 = vrot.slane %v736_v30, %v1651_v11  ;;  %v1476_v42 = vrot.slane %v967_v3, 9  ;;  %v1477_v44 = vrot.slane %v968_v32, 9  ;;  %v2002_v5 = vstv %s1968_s19 }
  0x88   :  { %v916_v45 = vcombine.low %v894_v31, %v901_v35  ;;  %v1045_v9 = vadd.f32 %v1474_v39, %v947_v60  ;;  %v1046_v46 = vadd.f32 %v1475_v40, %v948_v23  ;;  %v1063_v47 = vmul.f32 %v2002_v5, %v1639_v4 }
  0x89   :  { %v917_v48 = vcombine.low %v908_v36, %v915_v41  ;;  %v1047_v37 = vadd.f32 %v1476_v42, %v949_v2  ;;  %v1048_v49 = vadd.f32 %v1477_v44, %v950_v13  ;;  %v1064_v50 = vmul.f32 %v2002_v5, %v1641_v6 }
  0x8a   :  { %v924_v51 = vrot.slane %v916_v45, %v1651_v11  ;;  %v1065_v52 = vmul.f32 %v2002_v5, %v1643_v7  ;;  %v1066_v53 = vmul.f32 %v2002_v5, %v1645_v8  ;;  %v1491_v54 = vrot.slane %v1063_v47, 10 }
  0x8b   :  { %v931_v55 = vrot.slane %v917_v48, %v1651_v11  ;;  %v1492_v56 = vrot.slane %v1064_v50, 10  ;;  %v2015_v58 = vstv %s1984_s20  ;;  %v951_v4 = vmul.f32 %v1966_v57, %v1669_v20 }
  0x8c   :  { %v1493_v10 = vrot.slane %v1065_v52, 10  ;;  %v1494_v59 = vrot.slane %v1066_v53, 10  ;;  %v1143_v6 = vadd.f32 %v1491_v54, %v1045_v9  ;;  %v952_v60 = vmul.f32 %v1966_v57, %v1671_v21 }
  0x8d   :  { %v932_v61 = vcombine.low %v924_v51, %v931_v55  ;;  %v1144_v7 = vadd.f32 %v1492_v56, %v1046_v46  ;;  %v953_v8 = vmul.f32 %v1966_v57, %v1689_v38  ;;  %v954_v62 = vmul.f32 %v1966_v57, %v1691_v43 }
  0x8e   :  { %v1145_v63 = vadd.f32 %v1493_v10, %v1047_v37  ;;  %v1146_v23 = vadd.f32 %v1494_v59, %v1048_v49  ;;  %v1161_v0 = vadd.f32 %v2015_v58, %v1143_v6  ;;  %v969_v1 = vmul.f32 %v1982_v18, %v1669_v20 }
  0x8f   :  { %944 = vst [vmem:[#allocation9 + $0x61] ss:$4 sm:$0xff] %v932_v61  ;;  %v1162_v2 = vadd.f32 %v2015_v58, %v1144_v7  ;;  %v970_v13 = vmul.f32 %v1982_v18, %v1671_v21  ;;  %v971_v14 = vmul.f32 %v1982_v18, %v1689_v38  ;;  %v972_v15 = vmul.f32 %v1982_v18, %v1691_v43 }
  0x90   :  { %v1163_v17 = vadd.f32 %v2015_v58, %v1145_v63  ;;  %v1164_v25 = vadd.f32 %v2015_v58, %v1146_v23  ;;  %v1199_v22 = vrot.slane %v1161_v0, %v1651_v11  ;;  %v1478_v26 = vrot.slane %v969_v1, 9 }
  0x91   :  { %v1206_v29 = vrot.slane %v1162_v2, %v1651_v11  ;;  %v1479_v30 = vrot.slane %v970_v13, 9  ;;  %v1480_v31 = vrot.slane %v971_v14, 9  ;;  %v1481_v3 = vrot.slane %v972_v15, 9 }
  0x92   :  { %v1213_v32 = vrot.slane %v1163_v17, %v1651_v11  ;;  %v1220_v35 = vrot.slane %v1164_v25, %v1651_v11  ;;  %v1049_v36 = vadd.f32 %v1478_v26, %v951_v4  ;;  %v1067_v39 = vmul.f32 %v2002_v5, %v1669_v20 }
  0x93   :  { %v1221_v40 = vcombine.low %v1199_v22, %v1206_v29  ;;  %v1050_v41 = vadd.f32 %v1479_v30, %v952_v60  ;;  %v1051_v42 = vadd.f32 %v1480_v31, %v953_v8  ;;  %v1052_v44 = vadd.f32 %v1481_v3, %v954_v62 }
  0x94   :  { %v1222_v45 = vcombine.low %v1213_v32, %v1220_v35  ;;  %v1068_v9 = vmul.f32 %v2002_v5, %v1671_v21  ;;  %v1069_v46 = vmul.f32 %v2002_v5, %v1689_v38  ;;  %v1070_v47 = vmul.f32 %v2002_v5, %v1691_v43 }
  0x95   :  { %v1229_v48 = vrot.slane %v1221_v40, %v1651_v11  ;;  %v1495_v37 = vrot.slane %v1067_v39, 10  ;;  %v955_v20 = vmul.f32 %v1966_v57, %v1721_v19  ;;  %v956_v49 = vmul.f32 %v1966_v57, %v1723_v24 }
  0x96   :  { %v1236_v50 = vrot.slane %v1222_v45, %v1651_v11  ;;  %v1496_v51 = vrot.slane %v1068_v9, 10  ;;  %v1497_v52 = vrot.slane %v1069_v46, 10  ;;  %v1498_v21 = vrot.slane %v1070_v47, 10 }
  0x97   :  { %v1147_v53 = vadd.f32 %v1495_v37, %v1049_v36  ;;  %v957_v38 = vmul.f32 %v1966_v57, %v1731_v33  ;;  %v958_v43 = vmul.f32 %v1966_v57, %v1733_v34  ;;  %v973_v54 = vmul.f32 %v1982_v18, %v1721_v19 }
  0x98   :  { %v1237_v55 = vcombine.low %v1229_v48, %v1236_v50  ;;  %v1148_v56 = vadd.f32 %v1496_v51, %v1050_v41  ;;  %v1149_v4 = vadd.f32 %v1497_v52, %v1051_v42  ;;  %v1150_v10 = vadd.f32 %v1498_v21, %v1052_v44 }
  0x99   :  { %v1165_v59 = vadd.f32 %v2015_v58, %v1147_v53  ;;  %v974_v6 = vmul.f32 %v1982_v18, %v1723_v24  ;;  %v975_v60 = vmul.f32 %v1982_v18, %v1731_v33  ;;  %v976_v61 = vmul.f32 %v1982_v18, %v1733_v34 }
  0x9a   :  { %1378 = vst [vmem:[#allocation9 + $0x2] ss:$4 sm:$0xff] %v1237_v55  ;;  %v1166_v7 = vadd.f32 %v2015_v58, %v1148_v56  ;;  %v1167_v8 = vadd.f32 %v2015_v58, %v1149_v4  ;;  %v1168_v62 = vadd.f32 %v2015_v58, %v1150_v10  ;;  %v1482_v63 = vrot.slane %v973_v54, 9 }
  0x9b   :  { %v1244_v23 = vrot.slane %v1165_v59, %v1651_v11  ;;  %v1483_v0 = vrot.slane %v974_v6, 9  ;;  %v1484_v1 = vrot.slane %v975_v60, 9  ;;  %v1485_v2 = vrot.slane %v976_v61, 9 }
  0x9c   :  { %v1251_v13 = vrot.slane %v1166_v7, %v1651_v11  ;;  %v1258_v14 = vrot.slane %v1167_v8, %v1651_v11  ;;  %v1265_v15 = vrot.slane %v1168_v62, %v1651_v11  ;;  %v1053_v17 = vadd.f32 %v1482_v63, %v955_v20 }
  0x9d   :  { %v1054_v25 = vadd.f32 %v1483_v0, %v956_v49  ;;  %v1055_v22 = vadd.f32 %v1484_v1, %v957_v38  ;;  %v1056_v26 = vadd.f32 %v1485_v2, %v958_v43  ;;  %v1071_v29 = vmul.f32 %v2002_v5, %v1721_v19 }
  0x9e   :  { %v1266_v30 = vcombine.low %v1244_v23, %v1251_v13  ;;  %v1267_v31 = vcombine.low %v1258_v14, %v1265_v15  ;;  %v1072_v3 = vmul.f32 %v2002_v5, %v1723_v24  ;;  %v1073_v32 = vmul.f32 %v2002_v5, %v1731_v33 }
  0x9f   :  { %v1074_v35 = vmul.f32 %v2002_v5, %v1733_v34  ;;  %v1499_v36 = vrot.slane %v1071_v29, 10  ;;  %v959_v39 = vmul.f32 %v1966_v57, %v1761_v12  ;;  %v960_v40 = vmul.f32 %v1966_v57, %v1766_v16 }
  0xa0   :  { %v1274_v19 = vrot.slane %v1266_v30, %v1651_v11  ;;  %v1281_v41 = vrot.slane %v1267_v31, %v1651_v11  ;;  %v1500_v42 = vrot.slane %v1072_v3, 10  ;;  %v1501_v44 = vrot.slane %v1073_v32, 10 }
  0xa1   :  { %v1502_v24 = vrot.slane %v1074_v35, 10  ;;  %v1151_v45 = vadd.f32 %v1499_v36, %v1053_v17  ;;  %v961_v33 = vmul.f32 %v1966_v57, %v1771_v27  ;;  %v962_v34 = vmul.f32 %v1966_v57, %v1773_v28 }
  0xa2   :  { %v1282_v9 = vcombine.low %v1274_v19, %v1281_v41  ;;  %v1152_v46 = vadd.f32 %v1500_v42, %v1054_v25  ;;  %v1153_v47 = vadd.f32 %v1501_v44, %v1055_v22  ;;  %v977_v48 = vmul.f32 %v1982_v18, %v1761_v12 }
  0xa3   :  { %v1154_v37 = vadd.f32 %v1502_v24, %v1056_v26  ;;  %v1169_v20 = vadd.f32 %v2015_v58, %v1151_v45  ;;  %v978_v49 = vmul.f32 %v1982_v18, %v1766_v16  ;;  %v979_v50 = vmul.f32 %v1982_v18, %v1771_v27 }
  0xa4   :  { %1380 = vst [vmem:[#allocation9 + $0x22] ss:$4 sm:$0xff] %v1282_v9  ;;  %v1170_v51 = vadd.f32 %v2015_v58, %v1152_v46  ;;  %v1171_v57 = vadd.f32 %v2015_v58, %v1153_v47  ;;  %v980_v52 = vmul.f32 %v1982_v18, %v1773_v28  ;;  %v1486_v21 = vrot.slane %v977_v48, 9 }
  0xa5   :  { %v1172_v53 = vadd.f32 %v2015_v58, %v1154_v37  ;;  %v1289_v38 = vrot.slane %v1169_v20, %v1651_v11  ;;  %v1487_v43 = vrot.slane %v978_v49, 9  ;;  %v1488_v54 = vrot.slane %v979_v50, 9 }
  0xa6   :  { %v1296_v55 = vrot.slane %v1170_v51, %v1651_v11  ;;  %v1303_v56 = vrot.slane %v1171_v57, %v1651_v11  ;;  %v1489_v4 = vrot.slane %v980_v52, 9  ;;  %v1057_v59 = vadd.f32 %v1486_v21, %v959_v39 }
  0xa7   :  { %v1310_v10 = vrot.slane %v1172_v53, %v1651_v11  ;;  %v1058_v6 = vadd.f32 %v1487_v43, %v960_v40  ;;  %v1075_v60 = vmul.f32 %v2002_v5, %v1761_v12  ;;  %v1059_v61 = vadd.f32 %v1488_v54, %v961_v33 }
  0xa8   :  { %v1311_v18 = vcombine.low %v1289_v38, %v1296_v55  ;;  %v1076_v7 = vmul.f32 %v2002_v5, %v1766_v16  ;;  %v1077_v8 = vmul.f32 %v2002_v5, %v1771_v27  ;;  %v1060_v63 = vadd.f32 %v1489_v4, %v962_v34 }
  0xa9   :  { %v1312_v62 = vcombine.low %v1303_v56, %v1310_v10  ;;  %v1078_v23 = vmul.f32 %v2002_v5, %v1773_v28  ;;  %v1503_v0 = vrot.slane %v1075_v60, 10 }
  0xaa   :  { %v1319_v1 = vrot.slane %v1311_v18, %v1651_v11  ;;  %v1504_v2 = vrot.slane %v1076_v7, 10  ;;  %v1505_v13 = vrot.slane %v1077_v8, 10 }
  0xab   :  { %v1326_v12 = vrot.slane %v1312_v62, %v1651_v11  ;;  %v1506_v14 = vrot.slane %v1078_v23, 10  ;;  %v1155_v15 = vadd.f32 %v1503_v0, %v1057_v59 }
  0xac   :  { %v1156_v17 = vadd.f32 %v1504_v2, %v1058_v6  ;;  %v1157_v25 = vadd.f32 %v1505_v13, %v1059_v61 }
  0xad   :  { %v1327_v16 = vcombine.low %v1319_v1, %v1326_v12  ;;  %v1158_v22 = vadd.f32 %v1506_v14, %v1060_v63  ;;  %v1173_v27 = vadd.f32 %v2015_v58, %v1155_v15 }
  0xae   :  { %v1174_v26 = vadd.f32 %v2015_v58, %v1156_v17  ;;  %v1175_v29 = vadd.f32 %v2015_v58, %v1157_v25 }
  0xaf   :  { %1382 = vst [vmem:[#allocation9 + $0x42] ss:$4 sm:$0xff] %v1327_v16  ;;  %v1176_v28 = vadd.f32 %v2015_v58, %v1158_v22  ;;  %v1334_v5 = vrot.slane %v1173_v27, %v1651_v11 }
  0xb0   :  { %v1341_v30 = vrot.slane %v1174_v26, %v1651_v11  ;;  %v1348_v31 = vrot.slane %v1175_v29, %v1651_v11 }
  0xb1   :  { %v1355_v3 = vrot.slane %v1176_v28, %v1651_v11 }
  0xb2   :  { %v1356_v32 = vcombine.low %v1334_v5, %v1341_v30 }
  0xb3   :  { %v1357_v35 = vcombine.low %v1348_v31, %v1355_v3 }
  0xb4   :  { %v1364_v36 = vrot.slane %v1356_v32, %v1651_v11 }
  0xb5   :  { %v1371_v39 = vrot.slane %v1357_v35, %v1651_v11 }
  0xb7   :  { %v1372_v40 = vcombine.low %v1364_v36, %v1371_v39 }
  0xb9   :  { %1384 = vst [vmem:[#allocation9 + $0x62] ss:$4 sm:$0xff] %v1372_v40 }
  0xba   :  { %1568 = shalt.err (!%p1565_p6)
}
  0xbb   :  { %s1569_s25 = scalar_lea.hbm %s2144_s3, 2048 }
  0xbc   :  { %p1570_p7 = scmp.ne.s32.totalorder %s2144_s3, %s1569_s25  ;;  %p1573_p8 = scmp.lt.u32.totalorder %s1569_s25, %s2144_s3 }
  0xbe   :  { %p1575_p9 = pnand %p1573_p8, %p1570_p7 }
  0xc0   :  { %1578 = shalt.err (!%p1575_p9)
}
  0xc1   :  { %1394 = dma.vmem_to_hbm [thread:$0]  %s1392_s22, 2048, %s2144_s3, [#allocation4]  }
  0xc2   :  { %1585 = dma.done.wait [#allocation4], 2048  }
  0xc3   :  { %1586 = vsyncadd [#allocation4], 4294965248 }
  0xc4   :  { %1398 = vsyncpa [#allocation3], 1 }
  0xc5   :  { %1399 = vsyncpa [#allocation4], 1 }
  0xc6   :  { %1400 = vsyncpa [#allocation5], 1 }
  0xc7   :  { %1401 = vsyncpa [#allocation6], 1 }

</bundles_post_ra>
